<compile_context>
chip_gen: v5e
topology: v5e:2x2
jax: 0.10.0
libtpu: 0.0.40
codegen_flags: <defaults>
</compile_context>

<pallas_src>
import math
import operator
from functools import reduce

import jax
import jax.numpy as jnp
from jax.experimental import pallas as pl
from jax.experimental.pallas import tpu as pltpu

LANE_WIDTH = 512          # preferred lane-dense last dim (multiple of 128)
MAX_BLOCK_ROWS = 1024     # 1024 x 512 x 4B = 2 MiB per buffer
_HALF_LOG_2PI = 0.5 * math.log(2.0 * math.pi)

# Acklam's rational approximation of the standard-normal quantile (~1e-9 rel. error).
_ICDF_A = (-3.969683028665376e+01, 2.209460984245205e+02, -2.759285104469687e+02,
           1.383577518672690e+02, -3.066479806614716e+01, 2.506628277459239e+00)
_ICDF_B = (-5.447609879822406e+01, 1.615858368580409e+02, -1.556989798598866e+02,
           6.680131188771972e+01, -1.328068155288572e+01)
_ICDF_C = (-7.784894002430293e-03, -3.223964580411365e-01, -2.400758277161838e+00,
           -2.549732539343734e+00, 4.374664141464968e+00, 2.938163982698783e+00)
_ICDF_D = (7.784695709041462e-03, 3.224671290700398e-01, 2.445134137142996e+00,
           3.754408661907416e+00)
_P_LOW = 0.02425


def _poly(coeffs, x):
    acc = coeffs[0] * x + coeffs[1]
    for c in coeffs[2:]:
        acc = acc * x + c
    return acc


def _std_normal_icdf(p):
    """Branch-free standard-normal quantile (Acklam) using only portable ops."""
    p = jnp.clip(p, 1e-6, 1.0 - 1e-6)
    t = jnp.minimum(p, 1.0 - p)                       # (0, 0.5]
    # Central region.
    q = p - 0.5
    r = q * q
    x_c = (_poly(_ICDF_A, r) * q) / (_poly(_ICDF_B, r) * r + 1.0)
    # Tails (lower-tail formula evaluated at t, mirrored by symmetry).
    s = jnp.sqrt(-2.0 * jnp.log(t))
    x_lo = _poly(_ICDF_C, s) / (_poly(_ICDF_D, s) * s + 1.0)   # negative (lower tail)
    x_t = jnp.where(p < 0.5, x_lo, -x_lo)
    return jnp.where(t < _P_LOW, x_t, x_c)


def _uniform_from_bits(bits):
    """uint32 random bits -> uniform float32 in [0, 1) via the mantissa trick."""
    if bits.dtype != jnp.uint32:
        bits = pltpu.bitcast(bits, jnp.uint32)
    mant = jnp.bitwise_or(jnp.right_shift(bits, jnp.uint32(9)),
                          jnp.uint32(0x3F800000))
    return pltpu.bitcast(mant, jnp.float32) - 1.0


# ----------------------------- kernels ------------------------------------ #

def _make_hw_sample_kernel(mu, sigma):
    def kernel(seed_ref, out_ref):
        # Per-block seeding keeps results deterministic regardless of which
        # core executes which block (megacore-safe).
        pltpu.prng_seed(seed_ref[0], pl.program_id(0))
        bits = pltpu.prng_random_bits(out_ref.shape)
        u = _uniform_from_bits(bits)
        z = _std_normal_icdf(u)
        out_ref[...] = mu + sigma * z
    return kernel


def _make_icdf_sample_kernel(mu, sigma):
    def kernel(u_ref, out_ref):
        z = _std_normal_icdf(u_ref[...])
        out_ref[...] = mu + sigma * z
    return kernel


def _make_log_prob_kernel(mu, inv_sigma, log_norm):
    def kernel(x_ref, out_ref):
        z = (x_ref[...] - mu) * inv_sigma
        out_ref[...] = log_norm - 0.5 * (z * z)
    return kernel


# ----------------------- hardware-PRNG availability ------------------------ #

_HW_PRNG_AVAILABLE = None


def _hw_prng_available():
    """Probe-compile a tiny HW-PRNG kernel once; fall back cleanly if absent."""
    global _HW_PRNG_AVAILABLE
    if _HW_PRNG_AVAILABLE is None:
        try:
            probe = _make_hw_sample_kernel(0.0, 1.0)
            out = pl.pallas_call(
                probe,
                out_shape=jax.ShapeDtypeStruct((8, 128), jnp.float32),
                grid=(1,),
                in_specs=[pl.BlockSpec(memory_space=pltpu.MemorySpace.SMEM)],
                out_specs=pl.BlockSpec((8, 128), lambda i: (0, 0)),
            )(jnp.asarray([7], dtype=jnp.int32))
            jax.block_until_ready(out)
            _HW_PRNG_AVAILABLE = bool(jnp.all(jnp.isfinite(out)))
        except Exception:
            _HW_PRNG_AVAILABLE = False
    return _HW_PRNG_AVAILABLE


# ----------------------------- wrappers ------------------------------------ #

def _prod(shape):
    return reduce(operator.mul, shape, 1)


def _layout(total):
    """Choose a lane-dense slab layout for `total` f32 elements.

    Returns (rows, width, block_rows, n_blocks).  Prefers a width that divides
    `total` exactly so no pad / slice copies are needed.
    """
    for width in (512, 256, 128):
        if total % width == 0:
            rows = total // width
            break
    else:
        width = LANE_WIDTH
        rows = -(-total // width)
    if rows <= MAX_BLOCK_ROWS:
        return rows, width, rows, 1          # single block == full array dims
    n_blocks = -(-rows // MAX_BLOCK_ROWS)    # ragged last block is edge-masked
    return rows, width, MAX_BLOCK_ROWS, n_blocks


class GaussianPriorDistribution:
    """JAX/Pallas port of PriorDistribution with a Gaussian distribution."""

    GAUSSIAN = 0

    def __init__(self, mu=0.0, sigma=1.0, seed=0, debug_checks=False):
        self.mu_f = float(mu)
        self.sigma_f = float(sigma)
        self.seed = int(seed)
        self.debug_checks = debug_checks
        # Constants baked into the kernels (fixed prior parameters).
        self._inv_sigma_f = 1.0 / self.sigma_f
        self._log_norm_f = -math.log(self.sigma_f) - _HALF_LOG_2PI
        self._hw_sample_kernel = _make_hw_sample_kernel(self.mu_f, self.sigma_f)
        self._icdf_sample_kernel = _make_icdf_sample_kernel(self.mu_f, self.sigma_f)
        self._log_prob_kernel = _make_log_prob_kernel(
            self.mu_f, self._inv_sigma_f, self._log_norm_f)
        self._base_key = jax.random.PRNGKey(self.seed)
        self._n_calls = 0

    # forward(shape) == sample(shape)
    def __call__(self, shape=None):
        return self.sample(shape=shape)

    def sample(self, shape=None):
        sample_shape = tuple(shape) if shape is not None else ()
        total = max(_prod(sample_shape), 1)
        rows, width, block_rows, n_blocks = _layout(total)

        call_id = self._n_calls
        self._n_calls += 1

        if _hw_prng_available():
            # Write-only sampling path: random bits are generated in-kernel.
            seed_val = (self.seed * 2654435761 + call_id * 40503) & 0x7FFFFFFF
            seed_arr = jnp.asarray([seed_val], dtype=jnp.int32)
            flat = pl.pallas_call(
                self._hw_sample_kernel,
                out_shape=jax.ShapeDtypeStruct((rows, width), jnp.float32),
                grid=(n_blocks,),
                in_specs=[pl.BlockSpec(memory_space=pltpu.MemorySpace.SMEM)],
                out_specs=pl.BlockSpec((block_rows, width), lambda i: (i, 0)),
                compiler_params=pltpu.CompilerParams(
                    dimension_semantics=("parallel",)),
            )(seed_arr)
        else:
            # Portable fallback: uniforms from jax.random, ICDF in-kernel.
            key = jax.random.fold_in(self._base_key, call_id)
            u = jax.random.uniform(key, (rows, width), dtype=jnp.float32)
            flat = pl.pallas_call(
                self._icdf_sample_kernel,
                out_shape=jax.ShapeDtypeStruct((rows, width), jnp.float32),
                grid=(n_blocks,),
                in_specs=[pl.BlockSpec((block_rows, width), lambda i: (i, 0))],
                out_specs=pl.BlockSpec((block_rows, width), lambda i: (i, 0)),
                compiler_params=pltpu.CompilerParams(
                    dimension_semantics=("parallel",)),
            )(u)

        if rows * width != total:
            flat = flat.reshape(-1)[:total]
        return flat.reshape(sample_shape)

    def log_prob(self, x):
        x = jnp.asarray(x, dtype=jnp.float32)
        if x.size == 0:
            return x
        orig_shape = x.shape
        total = x.size
        rows, width, block_rows, n_blocks = _layout(total)

        x_flat = x.reshape(-1)                       # contiguous reshape: free
        padded = rows * width
        if padded != total:
            x_flat = jnp.pad(x_flat, (0, padded - total))
        x_slab = x_flat.reshape(rows, width)

        logp = pl.pallas_call(
            self._log_prob_kernel,
            out_shape=jax.ShapeDtypeStruct((rows, width), jnp.float32),
            grid=(n_blocks,),
            in_specs=[pl.BlockSpec((block_rows, width), lambda i: (i, 0))],
            out_specs=pl.BlockSpec((block_rows, width), lambda i: (i, 0)),
            compiler_params=pltpu.CompilerParams(
                dimension_semantics=("parallel",)),
        )(x_slab)

        if padded != total:
            logp = logp.reshape(-1)[:total]
        logp = logp.reshape(orig_shape)
        if self.debug_checks:
            # Debug-only: forces a device->host sync, kept off the hot path.
            assert int(jnp.isnan(logp).sum()) == 0, (
                "[!] ERROR: Found NaN values in log-prob of distribution.")
        return logp

    def prob(self, x):
        return jnp.exp(self.log_prob(x))

    def cdf(self, x):
        # Glue (not the hot path): Gaussian CDF via erf in plain JAX.
        x = jnp.asarray(x, dtype=jnp.float32)
        z = (x - self.mu_f) / self.sigma_f
        return 0.5 * (1.0 + jax.lax.erf(z / jnp.sqrt(2.0)))

    def icdf(self, x):
        x = jnp.asarray(x, dtype=jnp.float32)
        if self.debug_checks:
            assert int(((x < 0) | (x > 1)).sum()) == 0, (
                "[!] ERROR: Found values outside the range of 0 to 1 as input "
                "to the inverse cumulative distribution function.")
        # TODO(synk): erfinv-based icdf kept in plain JAX (no dedicated Pallas path).
        return self.mu_f + self.sigma_f * jnp.sqrt(2.0) * jax.scipy.special.erfinv(
            2.0 * x - 1.0)

    def info(self):
        return "Gaussian prior (mu=%.3f, sigma=%.3f)" % (self.mu_f, self.sigma_f)


# ------------------------------- main -------------------------------------- #

if __name__ == "__main__":
    key = jax.random.PRNGKey(0)

    prior = GaussianPriorDistribution(mu=0.0, sigma=1.0, seed=1234)

    # forward(shape) -> sample of that shape (NCHW-like small shape).
    sample_shape = (2, 4, 16, 16)
    samples = prior(sample_shape)
    samples = jax.block_until_ready(samples)

    assert samples.shape == sample_shape, samples.shape
    assert samples.dtype == jnp.float32
    assert bool(jnp.all(jnp.isfinite(samples)))
    # Loose sanity check that the samples look standard-normal.
    m = float(jnp.mean(samples))
    s = float(jnp.std(samples))
    assert abs(m) < 0.25, f"sample mean too far from 0: {m}"
    assert abs(s - 1.0) < 0.25, f"sample std too far from 1: {s}"

    # forward() with no shape -> scalar sample.
    s0 = jax.block_until_ready(prior())
    assert s0.shape == () and bool(jnp.isfinite(s0))

    # log_prob kernel vs. analytic reference on deterministic inputs.
    x = jax.random.normal(key, sample_shape, dtype=jnp.float32)
    logp = jax.block_until_ready(prior.log_prob(x))
    ref = jax.scipy.stats.norm.logpdf(x, loc=0.0, scale=1.0)
    assert jnp.allclose(logp, ref, atol=1e-5, rtol=1e-5)

    # prob consistency.
    p = prior.prob(x)
    assert jnp.allclose(p, jnp.exp(ref), atol=1e-5, rtol=1e-5)

    print("KERNEL_OK")
</pallas_src>

<mosaic_0001>
module attributes {stable_mosaic.version = 11 : i64} {
  func.func @kernel(%arg0: i32, %arg1: memref<1xi32, #tpu.memory_space<smem>>, %arg2: memref<8x128xf32, #tpu.memory_space<vmem>>) attributes {dimension_semantics = [#tpu.dimension_semantics<arbitrary>], iteration_bounds = array<i64: 1>, scalar_prefetch = 0 : i64, scratch_operands = 0 : i64, tpu.core_type = #tpu.core_type<tc>, window_params = [{transform_indices = @transform_0, window_bounds = array<i64: 1>}, {pipeline_mode = #tpu.pipeline_mode<synchronous>, transform_indices = @transform_1, window_bounds = array<i64: 8, 128>}]} {
    %c0 = arith.constant 0 : index
    %0 = memref.load %arg1[%c0] : memref<1xi32, #tpu.memory_space<smem>>
    "tpu.prng_set_seed_32"(%0, %arg0) : (i32, i32) -> ()
    %1 = "tpu.prng_random_bits"() : () -> vector<8x128xi32>
    %2 = tpu.bitcast %1 : vector<8x128xi32> -> vector<8x128xi32>
    %c9_i32 = arith.constant 9 : i32
    %3 = vector.broadcast %c9_i32 : i32 to vector<8x128xi32>
    %4 = arith.shrui %2, %3 : vector<8x128xi32>
    %c1065353216_i32 = arith.constant 1065353216 : i32
    %5 = vector.broadcast %c1065353216_i32 : i32 to vector<8x128xi32>
    %6 = arith.ori %4, %5 : vector<8x128xi32>
    %7 = tpu.bitcast %6 : vector<8x128xi32> -> vector<8x128xf32>
    %cst = arith.constant 1.000000e+00 : f32
    %8 = vector.broadcast %cst : f32 to vector<8x128xf32>
    %9 = arith.subf %7, %8 : vector<8x128xf32>
    %cst_0 = arith.constant 9.99999997E-7 : f32
    %cst_1 = arith.constant 0.999998986 : f32
    %10 = vector.broadcast %cst_0 : f32 to vector<8x128xf32>
    %11 = arith.maximumf %10, %9 : vector<8x128xf32>
    %12 = vector.broadcast %cst_1 : f32 to vector<8x128xf32>
    %13 = arith.minimumf %12, %11 : vector<8x128xf32>
    %cst_2 = arith.constant 1.000000e+00 : f32
    %14 = vector.broadcast %cst_2 : f32 to vector<8x128xf32>
    %15 = arith.subf %14, %13 : vector<8x128xf32>
    %16 = arith.minimumf %13, %15 : vector<8x128xf32>
    %cst_3 = arith.constant 5.000000e-01 : f32
    %17 = vector.broadcast %cst_3 : f32 to vector<8x128xf32>
    %18 = arith.subf %13, %17 : vector<8x128xf32>
    %19 = arith.mulf %18, %18 : vector<8x128xf32>
    %cst_4 = arith.constant -39.6968307 : f32
    %20 = vector.broadcast %cst_4 : f32 to vector<8x128xf32>
    %21 = arith.mulf %20, %19 : vector<8x128xf32>
    %cst_5 = arith.constant 220.946106 : f32
    %22 = vector.broadcast %cst_5 : f32 to vector<8x128xf32>
    %23 = arith.addf %21, %22 : vector<8x128xf32>
    %24 = arith.mulf %23, %19 : vector<8x128xf32>
    %cst_6 = arith.constant -275.928497 : f32
    %25 = vector.broadcast %cst_6 : f32 to vector<8x128xf32>
    %26 = arith.addf %24, %25 : vector<8x128xf32>
    %27 = arith.mulf %26, %19 : vector<8x128xf32>
    %cst_7 = arith.constant 138.357758 : f32
    %28 = vector.broadcast %cst_7 : f32 to vector<8x128xf32>
    %29 = arith.addf %27, %28 : vector<8x128xf32>
    %30 = arith.mulf %29, %19 : vector<8x128xf32>
    %cst_8 = arith.constant -30.6647987 : f32
    %31 = vector.broadcast %cst_8 : f32 to vector<8x128xf32>
    %32 = arith.addf %30, %31 : vector<8x128xf32>
    %33 = arith.mulf %32, %19 : vector<8x128xf32>
    %cst_9 = arith.constant 2.50662827 : f32
    %34 = vector.broadcast %cst_9 : f32 to vector<8x128xf32>
    %35 = arith.addf %33, %34 : vector<8x128xf32>
    %36 = arith.mulf %35, %18 : vector<8x128xf32>
    %cst_10 = arith.constant -54.4760971 : f32
    %37 = vector.broadcast %cst_10 : f32 to vector<8x128xf32>
    %38 = arith.mulf %37, %19 : vector<8x128xf32>
    %cst_11 = arith.constant 161.585831 : f32
    %39 = vector.broadcast %cst_11 : f32 to vector<8x128xf32>
    %40 = arith.addf %38, %39 : vector<8x128xf32>
    %41 = arith.mulf %40, %19 : vector<8x128xf32>
    %cst_12 = arith.constant -155.698975 : f32
    %42 = vector.broadcast %cst_12 : f32 to vector<8x128xf32>
    %43 = arith.addf %41, %42 : vector<8x128xf32>
    %44 = arith.mulf %43, %19 : vector<8x128xf32>
    %cst_13 = arith.constant 66.8013153 : f32
    %45 = vector.broadcast %cst_13 : f32 to vector<8x128xf32>
    %46 = arith.addf %44, %45 : vector<8x128xf32>
    %47 = arith.mulf %46, %19 : vector<8x128xf32>
    %cst_14 = arith.constant -13.2806816 : f32
    %48 = vector.broadcast %cst_14 : f32 to vector<8x128xf32>
    %49 = arith.addf %47, %48 : vector<8x128xf32>
    %50 = arith.mulf %49, %19 : vector<8x128xf32>
    %cst_15 = arith.constant 1.000000e+00 : f32
    %51 = vector.broadcast %cst_15 : f32 to vector<8x128xf32>
    %52 = arith.addf %50, %51 : vector<8x128xf32>
    %53 = arith.divf %36, %52 : vector<8x128xf32>
    %54 = math.log %16 : vector<8x128xf32>
    %cst_16 = arith.constant -2.000000e+00 : f32
    %55 = vector.broadcast %cst_16 : f32 to vector<8x128xf32>
    %56 = arith.mulf %55, %54 : vector<8x128xf32>
    %57 = math.sqrt %56 : vector<8x128xf32>
    %cst_17 = arith.constant -0.0077848942 : f32
    %58 = vector.broadcast %cst_17 : f32 to vector<8x128xf32>
    %59 = arith.mulf %58, %57 : vector<8x128xf32>
    %cst_18 = arith.constant -0.322396457 : f32
    %60 = vector.broadcast %cst_18 : f32 to vector<8x128xf32>
    %61 = arith.addf %59, %60 : vector<8x128xf32>
    %62 = arith.mulf %61, %57 : vector<8x128xf32>
    %cst_19 = arith.constant -2.40075827 : f32
    %63 = vector.broadcast %cst_19 : f32 to vector<8x128xf32>
    %64 = arith.addf %62, %63 : vector<8x128xf32>
    %65 = arith.mulf %64, %57 : vector<8x128xf32>
    %cst_20 = arith.constant -2.54973245 : f32
    %66 = vector.broadcast %cst_20 : f32 to vector<8x128xf32>
    %67 = arith.addf %65, %66 : vector<8x128xf32>
    %68 = arith.mulf %67, %57 : vector<8x128xf32>
    %cst_21 = arith.constant 4.37466431 : f32
    %69 = vector.broadcast %cst_21 : f32 to vector<8x128xf32>
    %70 = arith.addf %68, %69 : vector<8x128xf32>
    %71 = arith.mulf %70, %57 : vector<8x128xf32>
    %cst_22 = arith.constant 2.938164 : f32
    %72 = vector.broadcast %cst_22 : f32 to vector<8x128xf32>
    %73 = arith.addf %71, %72 : vector<8x128xf32>
    %cst_23 = arith.constant 0.00778469583 : f32
    %74 = vector.broadcast %cst_23 : f32 to vector<8x128xf32>
    %75 = arith.mulf %74, %57 : vector<8x128xf32>
    %cst_24 = arith.constant 0.322467119 : f32
    %76 = vector.broadcast %cst_24 : f32 to vector<8x128xf32>
    %77 = arith.addf %75, %76 : vector<8x128xf32>
    %78 = arith.mulf %77, %57 : vector<8x128xf32>
    %cst_25 = arith.constant 2.44513416 : f32
    %79 = vector.broadcast %cst_25 : f32 to vector<8x128xf32>
    %80 = arith.addf %78, %79 : vector<8x128xf32>
    %81 = arith.mulf %80, %57 : vector<8x128xf32>
    %cst_26 = arith.constant 3.7544086 : f32
    %82 = vector.broadcast %cst_26 : f32 to vector<8x128xf32>
    %83 = arith.addf %81, %82 : vector<8x128xf32>
    %84 = arith.mulf %83, %57 : vector<8x128xf32>
    %cst_27 = arith.constant 1.000000e+00 : f32
    %85 = vector.broadcast %cst_27 : f32 to vector<8x128xf32>
    %86 = arith.addf %84, %85 : vector<8x128xf32>
    %87 = arith.divf %73, %86 : vector<8x128xf32>
    %cst_28 = arith.constant 5.000000e-01 : f32
    %88 = vector.broadcast %cst_28 : f32 to vector<8x128xf32>
    %89 = arith.cmpf olt, %13, %88 : vector<8x128xf32>
    %cst_29 = arith.constant 0.000000e+00 : f32
    %90 = vector.broadcast %cst_29 : f32 to vector<8x128xf32>
    %91 = arith.subf %90, %87 : vector<8x128xf32>
    %92 = arith.select %89, %87, %91 : vector<8x128xi1>, vector<8x128xf32>
    %cst_30 = arith.constant 2.425000e-02 : f32
    %93 = vector.broadcast %cst_30 : f32 to vector<8x128xf32>
    %94 = arith.cmpf olt, %16, %93 : vector<8x128xf32>
    %95 = arith.select %94, %92, %53 : vector<8x128xi1>, vector<8x128xf32>
    %cst_31 = arith.constant 1.000000e+00 : f32
    %96 = vector.broadcast %cst_31 : f32 to vector<8x128xf32>
    %97 = arith.mulf %96, %95 : vector<8x128xf32>
    %cst_32 = arith.constant 0.000000e+00 : f32
    %98 = vector.broadcast %cst_32 : f32 to vector<8x128xf32>
    %99 = arith.addf %98, %97 : vector<8x128xf32>
    %c0_33 = arith.constant 0 : index
    %c0_34 = arith.constant 0 : index
    %100 = vector.load %arg2[%c0_33, %c0_34] : memref<8x128xf32, #tpu.memory_space<vmem>>, vector<8x128xf32>
    tpu.vector_store %arg2[%c0_33, %c0_34], %99 {strides = array<i32>} : memref<8x128xf32, #tpu.memory_space<vmem>>, vector<8x128xf32>,
    return
  }
  func.func @transform_0(%arg0: i32) -> i32 {
    %c0_i32 = arith.constant 0 : i32
    %c0_i32_0 = arith.constant 0 : i32
    return %c0_i32 : i32
  }
  func.func @transform_1(%arg0: i32) -> (i32, i32) {
    %c0_i32 = arith.constant 0 : i32
    %c0_i32_0 = arith.constant 0 : i32
    %c0_i32_1 = arith.constant 0 : i32
    return %c0_i32, %c0_i32_0 : i32, i32
  }
}

module attributes {stable_mosaic.version = 11 : i64} {
  func.func @kernel(%arg0: i32, %arg1: memref<4x512xf32, #tpu.memory_space<vmem>>, %arg2: memref<4x512xf32, #tpu.memory_space<vmem>>) attributes {dimension_semantics = [#tpu.dimension_semantics<parallel>], iteration_bounds = array<i64: 1>, scalar_prefetch = 0 : i64, scratch_operands = 0 : i64, tpu.core_type = #tpu.core_type<tc>, window_params = [{transform_indices = @transform_0, window_bounds = array<i64: 4, 512>}, {transform_indices = @transform_1, window_bounds = array<i64: 4, 512>}]} {
    %c0 = arith.constant 0 : index
    %c0_0 = arith.constant 0 : index
    %0 = vector.load %arg1[%c0, %c0_0] : memref<4x512xf32, #tpu.memory_space<vmem>>, vector<4x512xf32>
    %cst = arith.constant 9.99999997E-7 : f32
    %cst_1 = arith.constant 0.999998986 : f32
    %1 = vector.broadcast %cst : f32 to vector<4x512xf32>
    %2 = arith.maximumf %1, %0 : vector<4x512xf32>
    %3 = vector.broadcast %cst_1 : f32 to vector<4x512xf32>
    %4 = arith.minimumf %3, %2 : vector<4x512xf32>
    %cst_2 = arith.constant 1.000000e+00 : f32
    %5 = vector.broadcast %cst_2 : f32 to vector<4x512xf32>
    %6 = arith.subf %5, %4 : vector<4x512xf32>
    %7 = arith.minimumf %4, %6 : vector<4x512xf32>
    %cst_3 = arith.constant 5.000000e-01 : f32
    %8 = vector.broadcast %cst_3 : f32 to vector<4x512xf32>
    %9 = arith.subf %4, %8 : vector<4x512xf32>
    %10 = arith.mulf %9, %9 : vector<4x512xf32>
    %cst_4 = arith.constant -39.6968307 : f32
    %11 = vector.broadcast %cst_4 : f32 to vector<4x512xf32>
    %12 = arith.mulf %11, %10 : vector<4x512xf32>
    %cst_5 = arith.constant 220.946106 : f32
    %13 = vector.broadcast %cst_5 : f32 to vector<4x512xf32>
    %14 = arith.addf %12, %13 : vector<4x512xf32>
    %15 = arith.mulf %14, %10 : vector<4x512xf32>
    %cst_6 = arith.constant -275.928497 : f32
    %16 = vector.broadcast %cst_6 : f32 to vector<4x512xf32>
    %17 = arith.addf %15, %16 : vector<4x512xf32>
    %18 = arith.mulf %17, %10 : vector<4x512xf32>
    %cst_7 = arith.constant 138.357758 : f32
    %19 = vector.broadcast %cst_7 : f32 to vector<4x512xf32>
    %20 = arith.addf %18, %19 : vector<4x512xf32>
    %21 = arith.mulf %20, %10 : vector<4x512xf32>
    %cst_8 = arith.constant -30.6647987 : f32
    %22 = vector.broadcast %cst_8 : f32 to vector<4x512xf32>
    %23 = arith.addf %21, %22 : vector<4x512xf32>
    %24 = arith.mulf %23, %10 : vector<4x512xf32>
    %cst_9 = arith.constant 2.50662827 : f32
    %25 = vector.broadcast %cst_9 : f32 to vector<4x512xf32>
    %26 = arith.addf %24, %25 : vector<4x512xf32>
    %27 = arith.mulf %26, %9 : vector<4x512xf32>
    %cst_10 = arith.constant -54.4760971 : f32
    %28 = vector.broadcast %cst_10 : f32 to vector<4x512xf32>
    %29 = arith.mulf %28, %10 : vector<4x512xf32>
    %cst_11 = arith.constant 161.585831 : f32
    %30 = vector.broadcast %cst_11 : f32 to vector<4x512xf32>
    %31 = arith.addf %29, %30 : vector<4x512xf32>
    %32 = arith.mulf %31, %10 : vector<4x512xf32>
    %cst_12 = arith.constant -155.698975 : f32
    %33 = vector.broadcast %cst_12 : f32 to vector<4x512xf32>
    %34 = arith.addf %32, %33 : vector<4x512xf32>
    %35 = arith.mulf %34, %10 : vector<4x512xf32>
    %cst_13 = arith.constant 66.8013153 : f32
    %36 = vector.broadcast %cst_13 : f32 to vector<4x512xf32>
    %37 = arith.addf %35, %36 : vector<4x512xf32>
    %38 = arith.mulf %37, %10 : vector<4x512xf32>
    %cst_14 = arith.constant -13.2806816 : f32
    %39 = vector.broadcast %cst_14 : f32 to vector<4x512xf32>
    %40 = arith.addf %38, %39 : vector<4x512xf32>
    %41 = arith.mulf %40, %10 : vector<4x512xf32>
    %cst_15 = arith.constant 1.000000e+00 : f32
    %42 = vector.broadcast %cst_15 : f32 to vector<4x512xf32>
    %43 = arith.addf %41, %42 : vector<4x512xf32>
    %44 = arith.divf %27, %43 : vector<4x512xf32>
    %45 = math.log %7 : vector<4x512xf32>
    %cst_16 = arith.constant -2.000000e+00 : f32
    %46 = vector.broadcast %cst_16 : f32 to vector<4x512xf32>
    %47 = arith.mulf %46, %45 : vector<4x512xf32>
    %48 = math.sqrt %47 : vector<4x512xf32>
    %cst_17 = arith.constant -0.0077848942 : f32
    %49 = vector.broadcast %cst_17 : f32 to vector<4x512xf32>
    %50 = arith.mulf %49, %48 : vector<4x512xf32>
    %cst_18 = arith.constant -0.322396457 : f32
    %51 = vector.broadcast %cst_18 : f32 to vector<4x512xf32>
    %52 = arith.addf %50, %51 : vector<4x512xf32>
    %53 = arith.mulf %52, %48 : vector<4x512xf32>
    %cst_19 = arith.constant -2.40075827 : f32
    %54 = vector.broadcast %cst_19 : f32 to vector<4x512xf32>
    %55 = arith.addf %53, %54 : vector<4x512xf32>
    %56 = arith.mulf %55, %48 : vector<4x512xf32>
    %cst_20 = arith.constant -2.54973245 : f32
    %57 = vector.broadcast %cst_20 : f32 to vector<4x512xf32>
    %58 = arith.addf %56, %57 : vector<4x512xf32>
    %59 = arith.mulf %58, %48 : vector<4x512xf32>
    %cst_21 = arith.constant 4.37466431 : f32
    %60 = vector.broadcast %cst_21 : f32 to vector<4x512xf32>
    %61 = arith.addf %59, %60 : vector<4x512xf32>
    %62 = arith.mulf %61, %48 : vector<4x512xf32>
    %cst_22 = arith.constant 2.938164 : f32
    %63 = vector.broadcast %cst_22 : f32 to vector<4x512xf32>
    %64 = arith.addf %62, %63 : vector<4x512xf32>
    %cst_23 = arith.constant 0.00778469583 : f32
    %65 = vector.broadcast %cst_23 : f32 to vector<4x512xf32>
    %66 = arith.mulf %65, %48 : vector<4x512xf32>
    %cst_24 = arith.constant 0.322467119 : f32
    %67 = vector.broadcast %cst_24 : f32 to vector<4x512xf32>
    %68 = arith.addf %66, %67 : vector<4x512xf32>
    %69 = arith.mulf %68, %48 : vector<4x512xf32>
    %cst_25 = arith.constant 2.44513416 : f32
    %70 = vector.broadcast %cst_25 : f32 to vector<4x512xf32>
    %71 = arith.addf %69, %70 : vector<4x512xf32>
    %72 = arith.mulf %71, %48 : vector<4x512xf32>
    %cst_26 = arith.constant 3.7544086 : f32
    %73 = vector.broadcast %cst_26 : f32 to vector<4x512xf32>
    %74 = arith.addf %72, %73 : vector<4x512xf32>
    %75 = arith.mulf %74, %48 : vector<4x512xf32>
    %cst_27 = arith.constant 1.000000e+00 : f32
    %76 = vector.broadcast %cst_27 : f32 to vector<4x512xf32>
    %77 = arith.addf %75, %76 : vector<4x512xf32>
    %78 = arith.divf %64, %77 : vector<4x512xf32>
    %cst_28 = arith.constant 5.000000e-01 : f32
    %79 = vector.broadcast %cst_28 : f32 to vector<4x512xf32>
    %80 = arith.cmpf olt, %4, %79 : vector<4x512xf32>
    %cst_29 = arith.constant 0.000000e+00 : f32
    %81 = vector.broadcast %cst_29 : f32 to vector<4x512xf32>
    %82 = arith.subf %81, %78 : vector<4x512xf32>
    %83 = arith.select %80, %78, %82 : vector<4x512xi1>, vector<4x512xf32>
    %cst_30 = arith.constant 2.425000e-02 : f32
    %84 = vector.broadcast %cst_30 : f32 to vector<4x512xf32>
    %85 = arith.cmpf olt, %7, %84 : vector<4x512xf32>
    %86 = arith.select %85, %83, %44 : vector<4x512xi1>, vector<4x512xf32>
    %cst_31 = arith.constant 1.000000e+00 : f32
    %87 = vector.broadcast %cst_31 : f32 to vector<4x512xf32>
    %88 = arith.mulf %87, %86 : vector<4x512xf32>
    %cst_32 = arith.constant 0.000000e+00 : f32
    %89 = vector.broadcast %cst_32 : f32 to vector<4x512xf32>
    %90 = arith.addf %89, %88 : vector<4x512xf32>
    %c0_33 = arith.constant 0 : index
    %c0_34 = arith.constant 0 : index
    %91 = vector.load %arg2[%c0_33, %c0_34] : memref<4x512xf32, #tpu.memory_space<vmem>>, vector<4x512xf32>
    tpu.vector_store %arg2[%c0_33, %c0_34], %90 {strides = array<i32>} : memref<4x512xf32, #tpu.memory_space<vmem>>, vector<4x512xf32>,
    return
  }
  func.func @transform_0(%arg0: i32) -> (i32, i32) {
    %c0_i32 = arith.constant 0 : i32
    %c0_i32_0 = arith.constant 0 : i32
    return %arg0, %c0_i32 : i32, i32
  }
  func.func @transform_1(%arg0: i32) -> (i32, i32) {
    %c0_i32 = arith.constant 0 : i32
    %c0_i32_0 = arith.constant 0 : i32
    return %arg0, %c0_i32 : i32, i32
  }
}

</mosaic_0001>

<bundles_post_ra>
// kernel: tpu_custom_call.1
= control target key start
LH: loop header
LB: loop body
LE: loop exit
PB: predicated region body
PF: predicated region fallthrough
CT: control target
= control target key end

     0   :  { %7 = vsyncpa [#allocation4], 0  ;;  %v11_v0 = vlaneseq  ;;  %s335_s0 = inlined_call_operand.<no memory space> [shape: s32[1], index: 0, kind: input, shape index: {}]   ;;  %s336_s1 = inlined_call_operand.hbm [shape: f32[8,128], index: 1, kind: output, shape index: {}]  }
   0x1   :  { %v304_v1 = vstv %s335_s0  ;;  %s290_s0 = smov [#allocation3]   ;;  %s244_s11 = sshll.u32 %s336_s1, 4  ;;  %s245_s11 = int_to_ptr.hbm [resolvable:$true] %s244_s11 }
   0x2   :  { %v17_v2 = vadd.s32 %v304_v1, %v11_v0  ;;  %v308_v21 = vxor.u32 466688986, %v304_v1  ;;  %s242_s8 = sshll.u32 %s290_s0, 4  ;;  %s243_s8 = int_to_ptr.vmem [resolvable:$true] %s242_s8 }
   0x4   :  { %v18_v3 = vadd.s32 %v17_v2, %v11_v0  ;;  %v19_v4 = vshll.u32 %v17_v2, 13  ;;  %v20_v5 = vshrl.u32 %v17_v2, 19 }
   0x6   :  { %v21_v6 = vor.u32 %v20_v5, %v19_v4 }
   0x8   :  { %v22_v7 = vxor.u32 %v21_v6, %v18_v3 }
   0xa   :  { %v23_v8 = vadd.s32 %v22_v7, %v18_v3  ;;  %v24_v9 = vshll.u32 %v22_v7, 15  ;;  %v25_v10 = vshrl.u32 %v22_v7, 17 }
   0xc   :  { %v26_v11 = vor.u32 %v25_v10, %v24_v9 }
   0xe   :  { %v27_v12 = vxor.u32 %v26_v11, %v23_v8 }
  0x10   :  { %v28_v13 = vadd.s32 %v27_v12, %v23_v8  ;;  %v29_v14 = vshll.u32 %v27_v12, 26  ;;  %v30_v15 = vshrl.u32 %v27_v12, 6 }
  0x12   :  { %v31_v16 = vor.u32 %v30_v15, %v29_v14 }
  0x14   :  { %v32_v17 = vxor.u32 %v31_v16, %v28_v13 }
  0x16   :  { %v33_v18 = vadd.s32 %v32_v17, %v28_v13  ;;  %v34_v19 = vshll.u32 %v32_v17, 6  ;;  %v35_v20 = vshrl.u32 %v32_v17, 26 }
  0x18   :  { %v36_v22 = vor.u32 %v35_v20, %v34_v19  ;;  %v38_v24 = vadd.s32 %v33_v18, %v304_v1 }
  0x1a   :  { %v37_v23 = vxor.u32 %v36_v22, %v33_v18 }
  0x1c   :  { %v39_v25 = vadd.s32 %v37_v23, %v308_v21 }
  0x1e   :  { %v40_v26 = vadd.s32 1, %v39_v25 }
  0x20   :  { %v41_v27 = vadd.s32 %v40_v26, %v38_v24  ;;  %v42_v28 = vshll.u32 %v40_v26, 17  ;;  %v43_v29 = vshrl.u32 %v40_v26, 15 }
  0x22   :  { %v44_v30 = vor.u32 %v43_v29, %v42_v28 }
  0x24   :  { %v45_v31 = vxor.u32 %v44_v30, %v41_v27 }
  0x26   :  { %v46_v32 = vadd.s32 %v45_v31, %v41_v27  ;;  %v47_v33 = vshll.u32 %v45_v31, 29  ;;  %v48_v34 = vshrl.u32 %v45_v31, 3 }
  0x28   :  { %v49_v35 = vor.u32 %v48_v34, %v47_v33 }
  0x2a   :  { %v50_v36 = vxor.u32 %v49_v35, %v46_v32 }
  0x2c   :  { %v51_v37 = vadd.s32 %v50_v36, %v46_v32  ;;  %v52_v38 = vshll.u32 %v50_v36, 16  ;;  %v53_v39 = vshrl.u32 %v50_v36, 16 }
  0x2e   :  { %v54_v40 = vor.u32 %v53_v39, %v52_v38 }
  0x30   :  { %v55_v41 = vxor.u32 %v54_v40, %v51_v37 }
  0x32   :  { %v56_v42 = vadd.s32 %v55_v41, %v51_v37  ;;  %v57_v43 = vshll.u32 %v55_v41, 24  ;;  %v58_v44 = vshrl.u32 %v55_v41, 8 }
  0x34   :  { %v59_v45 = vor.u32 %v58_v44, %v57_v43  ;;  %v61_v47 = vadd.s32 %v56_v42, %v308_v21 }
  0x36   :  { %v60_v46 = vxor.u32 %v59_v45, %v56_v42 }
  0x38   :  { %v63_v48 = vadd.s32 2, %v60_v46 }
  0x3a   :  { %v64_v49 = vadd.s32 %v63_v48, %v61_v47  ;;  %v65_v50 = vshll.u32 %v63_v48, 13  ;;  %v66_v51 = vshrl.u32 %v63_v48, 19 }
  0x3c   :  { %v67_v52 = vor.u32 %v66_v51, %v65_v50 }
  0x3e   :  { %v68_v53 = vxor.u32 %v67_v52, %v64_v49 }
  0x40   :  { %v69_v54 = vadd.s32 %v68_v53, %v64_v49  ;;  %v70_v55 = vshll.u32 %v68_v53, 15  ;;  %v71_v56 = vshrl.u32 %v68_v53, 17 }
  0x42   :  { %v72_v57 = vor.u32 %v71_v56, %v70_v55 }
  0x44   :  { %v73_v58 = vxor.u32 %v72_v57, %v69_v54 }
  0x46   :  { %v74_v59 = vadd.s32 %v73_v58, %v69_v54  ;;  %v75_v60 = vshll.u32 %v73_v58, 26  ;;  %v76_v61 = vshrl.u32 %v73_v58, 6 }
  0x48   :  { %v77_v62 = vor.u32 %v76_v61, %v75_v60 }
  0x4a   :  { %v78_v63 = vxor.u32 %v77_v62, %v74_v59 }
  0x4c   :  { %v79_v0 = vadd.s32 %v78_v63, %v74_v59  ;;  %v80_v2 = vshll.u32 %v78_v63, 6  ;;  %v81_v3 = vshrl.u32 %v78_v63, 26 }
  0x4e   :  { %v82_v4 = vor.u32 %v81_v3, %v80_v2 }
  0x50   :  { %v83_v5 = vxor.u32 %v82_v4, %v79_v0 }
  0x52   :  { %v85_v6 = vadd.s32 %v83_v5, %v304_v1 }
  0x54   :  { %v86_v7 = vadd.s32 3, %v85_v6 }
  0x56   :  { %v87_v8 = vadd.s32 %v86_v7, %v79_v0  ;;  %v88_v9 = vshll.u32 %v86_v7, 17  ;;  %v89_v10 = vshrl.u32 %v86_v7, 15 }
  0x58   :  { %v90_v11 = vor.u32 %v89_v10, %v88_v9 }
  0x5a   :  { %v91_v12 = vxor.u32 %v90_v11, %v87_v8 }
  0x5c   :  { %v92_v13 = vadd.s32 %v91_v12, %v87_v8  ;;  %v93_v14 = vshll.u32 %v91_v12, 29  ;;  %v94_v15 = vshrl.u32 %v91_v12, 3 }
  0x5e   :  { %v95_v16 = vor.u32 %v94_v15, %v93_v14 }
  0x60   :  { %v96_v17 = vxor.u32 %v95_v16, %v92_v13 }
  0x62   :  { %v97_v18 = vadd.s32 %v96_v17, %v92_v13  ;;  %v98_v19 = vshll.u32 %v96_v17, 16  ;;  %v99_v20 = vshrl.u32 %v96_v17, 16 }
  0x64   :  { %v100_v22 = vor.u32 %v99_v20, %v98_v19 }
  0x66   :  { %v101_v23 = vxor.u32 %v100_v22, %v97_v18 }
  0x68   :  { %v102_v24 = vadd.s32 %v101_v23, %v97_v18  ;;  %v103_v25 = vshll.u32 %v101_v23, 24  ;;  %v104_v26 = vshrl.u32 %v101_v23, 8 }
  0x6a   :  { %v105_v27 = vor.u32 %v104_v26, %v103_v25  ;;  %v107_v29 = vadd.s32 %v102_v24, %v304_v1 }
  0x6c   :  { %v106_v28 = vxor.u32 %v105_v27, %v102_v24 }
  0x6e   :  { %v108_v30 = vadd.s32 %v106_v28, %v308_v21 }
  0x70   :  { %v109_v31 = vadd.s32 4, %v108_v30 }
  0x72   :  { %v110_v32 = vadd.s32 %v109_v31, %v107_v29  ;;  %v111_v33 = vshll.u32 %v109_v31, 13  ;;  %v112_v34 = vshrl.u32 %v109_v31, 19 }
  0x74   :  { %v113_v35 = vor.u32 %v112_v34, %v111_v33 }
  0x76   :  { %v114_v36 = vxor.u32 %v113_v35, %v110_v32 }
  0x78   :  { %v115_v37 = vadd.s32 %v114_v36, %v110_v32  ;;  %v116_v38 = vshll.u32 %v114_v36, 15  ;;  %v117_v39 = vshrl.u32 %v114_v36, 17 }
  0x7a   :  { %v118_v40 = vor.u32 %v117_v39, %v116_v38 }
  0x7c   :  { %v119_v41 = vxor.u32 %v118_v40, %v115_v37 }
  0x7e   :  { %v120_v42 = vadd.s32 %v119_v41, %v115_v37  ;;  %v121_v43 = vshll.u32 %v119_v41, 26  ;;  %v122_v44 = vshrl.u32 %v119_v41, 6 }
  0x80   :  { %v123_v45 = vor.u32 %v122_v44, %v121_v43 }
  0x82   :  { %v124_v46 = vxor.u32 %v123_v45, %v120_v42 }
  0x84   :  { %v125_v47 = vadd.s32 %v124_v46, %v120_v42  ;;  %v126_v1 = vshll.u32 %v124_v46, 6  ;;  %v127_v48 = vshrl.u32 %v124_v46, 26 }
  0x86   :  { %v128_v49 = vor.u32 %v127_v48, %v126_v1  ;;  %v130_v51 = vadd.s32 %v125_v47, %v308_v21 }
  0x88   :  { %v129_v50 = vxor.u32 %v128_v49, %v125_v47 }
  0x8a   :  { %v132_v52 = vadd.s32 5, %v129_v50 }
  0x8c   :  { %v133_v53 = vxor.u32 %v132_v52, %v130_v51 }
  0x8e   :  { %134 = set.rngseed %v133_v53 }
  0x8f   :  { %v135_v54 = vrng }
  0x90   :  { %v136_v55 = vshrl.u32 %v135_v54, 9 }
  0x92   :  { %v137_v56 = vor.u32 1065353216, %v136_v55 }
  0x94   :  { %v253_v57 = vadd.f32 -1.0, %v137_v56 }
  0x96   :  { %v140_v58 = vmax.f32 %v253_v57, 1e-06 }
  0x98   :  { %v317_v59 = vmin.f32 %v140_v58, 0.999999 }
  0x9a   :  { %v142_v60 = vsub.f32 1.0, %v317_v59  ;;  %v321_v61 = vadd.f32 -0.5, %v317_v59  ;;  %vm230_vm10 = vcmp.lt.f32.partialorder %v317_v59, 0.5 }
  0x9c   :  { %v324_v62 = vmin.f32 %v317_v59, %v142_v60  ;;  %v145_v21 = vmul.f32 %v321_v61, %v321_v61 }
  0x9e   :  { %v157_v63 = vmul.f32 -54.476097, %v145_v21  ;;  %256 = vlog2.f32 %v324_v62  ;;  %v146_v15 = vmul.f32 -39.69683, %v145_v21  ;;  %vm233_vm11 = vcmp.lt.f32.partialorder %v324_v62, 0.02425 }
  0xa0   :  { %v158_v0 = vadd.f32 161.58583, %v157_v63  ;;  %v147_v19 = vadd.f32 220.9461, %v146_v15 }
  0xa2   :  { %v159_v3 = vmul.f32 %v158_v0, %v145_v21  ;;  %v148_v27 = vmul.f32 %v147_v19, %v145_v21 }
  0xa4   :  { %v257_v2 = vpop.eup %256  ;;  %v160_v6 = vadd.f32 -155.69897, %v159_v3  ;;  %v149_v33 = vadd.f32 -275.9285, %v148_v27 }
  0xa5   :  { %v183_v4 = vmul.f32 0.6931472, %v257_v2 }
  0xa6   :  { %v161_v7 = vmul.f32 %v160_v6, %v145_v21  ;;  %v150_v37 = vmul.f32 %v149_v33, %v145_v21 }
  0xa7   :  { %v184_v5 = vmul.f32 -2.0, %v183_v4 }
  0xa8   :  { %v162_v9 = vadd.f32 66.801315, %v161_v7  ;;  %v151_v42 = vadd.f32 138.35776, %v150_v37 }
  0xa9   :  { %258 = vrsqrt.f32 %v184_v5  ;;  %vm192_vm0 = vcmp.eq.f32.partialorder %v184_v5, inf  ;;  %v195_v22 = vand.u32 2147483648, %v184_v5  ;;  %vm194_vm1 = vcmp.eq.f32.partialorder %v184_v5, 0.0 }
  0xaa   :  { %v163_v12 = vmul.f32 %v162_v9, %v145_v21  ;;  %v152_v46 = vmul.f32 %v151_v42, %v145_v21 }
  0xac   :  { %v164_v16 = vadd.f32 -13.280682, %v163_v12  ;;  %v153_v48 = vadd.f32 -30.664799, %v152_v46 }
  0xae   :  { %v165_v20 = vmul.f32 %v164_v16, %v145_v21  ;;  %v154_v53 = vmul.f32 %v153_v48, %v145_v21 }
  0xaf   :  { %v259_v8 = vpop.eup %258 }
  0xb0   :  { %v186_v10 = vmul.f32 %v259_v8, %v184_v5  ;;  %v166_v28 = vadd.f32 1.0, %v165_v20  ;;  %v155_v3 = vadd.f32 2.5066283, %v154_v53 }
  0xb2   :  { %v187_v11 = vmul.f32 %v259_v8, %v186_v10  ;;  %260 = vrcp.f32 %v166_v28  ;;  %v178_v56 = vand.u32 2147483648, %v166_v28  ;;  %vm172_vm4 = vweird.f32 %v166_v28 }
  0xb3   :  { %v176_v0 = vand.u32 2147483647, %v166_v28 }
  0xb4   :  { %v188_v13 = vmul.f32 0.5, %v187_v11  ;;  %v179_v6 = vor.u32 1.1754944e-38, %v178_v56  ;;  %v156_v11 = vmul.f32 %v321_v61, %v155_v3 }
  0xb5   :  { %vm177_vm9 = vcmp.eq.f32.partialorder %v176_v0, 8.507059e+37 }
  0xb6   :  { %v189_v14 = vsub.f32 1.5, %v188_v13 }
  0xb8   :  { %v190_v17 = vmul.f32 %v259_v8, %v189_v14  ;;  %v261_v39 = vpop.eup %260 }
  0xb9   :  { %v168_v43 = vmul.f32 %v261_v39, %v166_v28  ;;  %vm173_vm2 = vweird.f32 %v261_v39 }
  0xba   :  { %v191_v18 = vmul.f32 %v190_v17, %v184_v5  ;;  %vm174_vm5 = vmor %vm172_vm4, %vm173_vm2 }
  0xbb   :  { %v169_v47 = vsub.f32 1.0, %v168_v43 }
  0xbc   :  { %v193_v23 = vsel %vm192_vm0, %v184_v5, %v191_v18 }
  0xbd   :  { %v196_v24 = vsel %vm194_vm1, %v195_v22, %v193_v23  ;;  %v170_v50 = vmul.f32 %v261_v39, %v169_v47 }
  0xbe   :  { %v197_v25 = vmul.f32 -0.007784894, %v196_v24  ;;  %v207_v26 = vmul.f32 0.007784696, %v196_v24 }
  0xbf   :  { %v171_v55 = vadd.f32 %v261_v39, %v170_v50 }
  0xc0   :  { %v198_v29 = vadd.f32 -0.32239646, %v197_v25  ;;  %v208_v30 = vadd.f32 0.32246712, %v207_v26 }
  0xc1   :  { %v175_v4 = vsel %vm174_vm5, %v261_v39, %v171_v55 }
  0xc2   :  { %v199_v31 = vmul.f32 %v198_v29, %v196_v24  ;;  %v209_v32 = vmul.f32 %v208_v30, %v196_v24  ;;  %v180_v9 = vsel %vm177_vm9, %v179_v6, %v175_v4 }
  0xc3   :  { %v181_v13 = vmul.f32 %v180_v9, %v156_v11 }
  0xc4   :  { %v210_v34 = vadd.f32 2.4451342, %v209_v32  ;;  %v200_v35 = vadd.f32 -2.4007583, %v199_v31 }
  0xc6   :  { %v211_v36 = vmul.f32 %v210_v34, %v196_v24  ;;  %v201_v40 = vmul.f32 %v200_v35, %v196_v24 }
  0xc8   :  { %v212_v38 = vadd.f32 3.7544086, %v211_v36  ;;  %v202_v45 = vadd.f32 -2.5497324, %v201_v40 }
  0xca   :  { %v213_v41 = vmul.f32 %v212_v38, %v196_v24  ;;  %v203_v1 = vmul.f32 %v202_v45, %v196_v24 }
  0xcc   :  { %v214_v44 = vadd.f32 1.0, %v213_v41  ;;  %v204_v51 = vadd.f32 4.3746643, %v203_v1 }
  0xce   :  { %262 = vrcp.f32 %v214_v44  ;;  %v226_v57 = vand.u32 2147483648, %v214_v44  ;;  %v205_v58 = vmul.f32 %v204_v51, %v196_v24  ;;  %v224_v63 = vand.u32 2147483647, %v214_v44 }
  0xcf   :  { %vm220_vm6 = vweird.f32 %v214_v44 }
  0xd0   :  { %v227_v5 = vor.u32 1.1754944e-38, %v226_v57  ;;  %v206_v21 = vadd.f32 2.938164, %v205_v58  ;;  %vm225_vm8 = vcmp.eq.f32.partialorder %v224_v63, 8.507059e+37 }
  0xd4   :  { %v263_v49 = vpop.eup %262 }
  0xd5   :  { %v216_v52 = vmul.f32 %v263_v49, %v214_v44  ;;  %vm221_vm3 = vweird.f32 %v263_v49 }
  0xd6   :  { %vm222_vm7 = vmor %vm220_vm6, %vm221_vm3 }
  0xd7   :  { %v217_v54 = vsub.f32 1.0, %v216_v52 }
  0xd9   :  { %v218_v60 = vmul.f32 %v263_v49, %v217_v54 }
  0xdb   :  { %v219_v2 = vadd.f32 %v263_v49, %v218_v60 }
  0xdd   :  { %v223_v7 = vsel %vm222_vm7, %v263_v49, %v219_v2 }
  0xde   :  { %v228_v8 = vsel %vm225_vm8, %v227_v5, %v223_v7 }
  0xdf   :  { %v229_v10 = vmul.f32 %v228_v8, %v206_v21 }
  0xe1   :  { %v231_v12 = vsub.f32 0.0, %v229_v10 }
  0xe3   :  { %v232_v14 = vsel %vm230_vm10, %v229_v10, %v231_v12 }
  0xe4   :  { %v234_v15 = vsel %vm233_vm11, %v232_v14, %v181_v13 }
  0xe5   :  { %236 = vst [vmem:[#allocation3] sm:$0xff] %v234_v15 }
  0xe6   :  { %247 = dma.vmem_to_hbm [thread:$0]  %s243_s8, 128, %s245_s11, [#allocation4]  }
  0xe7   :  { %288 = dma.done.wait [#allocation4], 128  }
  0xe8   :  { %289 = vsyncadd [#allocation4], 4294967168 }
  0xe9   :  { %252 = vsyncpa [#allocation4], 1 }

// kernel: tpu_custom_call.1
= control target key start
LH: loop header
LB: loop body
LE: loop exit
PB: predicated region body
PF: predicated region fallthrough
CT: control target
= control target key end

     0   :  { %6 = vsyncpa [#allocation3], 0  ;;  %s449_s0 = inlined_call_operand.hbm [shape: f32[4,512], index: 0, kind: input, shape index: {}]   ;;  %s450_s1 = inlined_call_operand.hbm [shape: f32[4,512], index: 1, kind: output, shape index: {}]  }
   0x1   :  { %7 = vsyncpa [#allocation4], 0  ;;  %s13_s8 = sshll.u32 %s449_s0, 4  ;;  %s308_s9 = smov [#allocation2]   ;;  %s14_s8 = int_to_ptr.hbm [resolvable:$true] %s13_s8 }
   0x2   :  { %s15_s10 = sshll.u32 %s308_s9, 4  ;;  %s16_s10 = int_to_ptr.vmem [resolvable:$true] %s15_s10 }
   0x3   :  { %18 = dma.hbm_to_vmem [thread:$0]  %s14_s8, 256, %s16_s10, [#allocation3]  }
   0x4   :  { %304 = dma.done.wait [#allocation3], 256  }
   0x5   :  { %305 = vsyncadd [#allocation3], 4294967040  ;;  %v23_v0 = vld [vmem:[#allocation2] sm:$0xff]  ;;  %v24_v1 = vld [vmem:[#allocation2 + $0x8] sm:$0xff]  ;;  %s309_s0 = smov [#allocation5]   ;;  %s226_s14 = sshll.u32 %s450_s1, 4  ;;  %s227_s14 = int_to_ptr.hbm [resolvable:$true] %s226_s14 }
   0x6   :  { %v25_v2 = vmax.f32 %v23_v0, 1e-06  ;;  %v26_v3 = vmax.f32 %v24_v1, 1e-06  ;;  %s224_s11 = sshll.u32 %s309_s0, 4  ;;  %s225_s11 = int_to_ptr.vmem [resolvable:$true] %s224_s11 }
   0x8   :  { %v323_v4 = vmin.f32 %v25_v2, 0.999999  ;;  %v325_v5 = vmin.f32 %v26_v3, 0.999999 }
   0xa   :  { %v29_v6 = vsub.f32 1.0, %v323_v4  ;;  %v329_v7 = vadd.f32 -0.5, %v323_v4  ;;  %v30_v8 = vsub.f32 1.0, %v325_v5  ;;  %v333_v9 = vadd.f32 -0.5, %v325_v5 }
   0xc   :  { %v336_v10 = vmin.f32 %v323_v4, %v29_v6  ;;  %v340_v11 = vmul.f32 %v329_v7, %v329_v7  ;;  %v343_v12 = vmin.f32 %v325_v5, %v30_v8  ;;  %v347_v13 = vmul.f32 %v333_v9, %v333_v9 }
   0xe   :  { %v59_v14 = vmul.f32 -54.476097, %v340_v11  ;;  %240 = vlog2.f32 %v336_v10  ;;  %v60_v16 = vmul.f32 -54.476097, %v347_v13  ;;  %v37_v31 = vmul.f32 -39.69683, %v340_v11 }
   0xf   :  { %242 = vlog2.f32 %v343_v12  ;;  %v38_v52 = vmul.f32 -39.69683, %v347_v13 }
  0x10   :  { %v61_v15 = vadd.f32 161.58583, %v59_v14  ;;  %v62_v19 = vadd.f32 161.58583, %v60_v16  ;;  %v39_v37 = vadd.f32 220.9461, %v37_v31 }
  0x11   :  { %v40_v61 = vadd.f32 220.9461, %v38_v52 }
  0x12   :  { %v63_v17 = vmul.f32 %v61_v15, %v340_v11  ;;  %v64_v25 = vmul.f32 %v62_v19, %v347_v13  ;;  %v41_v44 = vmul.f32 %v39_v37, %v340_v11 }
  0x13   :  { %v42_v14 = vmul.f32 %v40_v61, %v347_v13 }
  0x14   :  { %v241_v18 = vpop.eup %240  ;;  %v65_v21 = vadd.f32 -155.69897, %v63_v17  ;;  %v66_v28 = vadd.f32 -155.69897, %v64_v25  ;;  %v43_v53 = vadd.f32 -275.9285, %v41_v44 }
  0x15   :  { %v243_v20 = vpop.eup %242  ;;  %v110_v22 = vmul.f32 0.6931472, %v241_v18 }
  0x16   :  { %v112_v23 = vmul.f32 0.6931472, %v243_v20  ;;  %v67_v26 = vmul.f32 %v65_v21, %v340_v11  ;;  %v68_v33 = vmul.f32 %v66_v28, %v347_v13  ;;  %v45_v63 = vmul.f32 %v43_v53, %v340_v11 }
  0x17   :  { %v113_v24 = vmul.f32 -2.0, %v110_v22 }
  0x18   :  { %v114_v27 = vmul.f32 -2.0, %v112_v23  ;;  %v69_v29 = vadd.f32 66.801315, %v67_v26  ;;  %v70_v38 = vadd.f32 66.801315, %v68_v33 }
  0x19   :  { %244 = vrsqrt.f32 %v113_v24  ;;  %vm122_vm0 = vcmp.eq.f32.partialorder %v113_v24, inf  ;;  %v125_v49 = vand.u32 2147483648, %v113_v24  ;;  %vm124_vm1 = vcmp.eq.f32.partialorder %v113_v24, 0.0 }
  0x1a   :  { %246 = vrsqrt.f32 %v114_v27  ;;  %v71_v34 = vmul.f32 %v69_v29, %v340_v11  ;;  %v72_v45 = vmul.f32 %v70_v38, %v347_v13  ;;  %vm134_vm2 = vcmp.eq.f32.partialorder %v114_v27, inf }
  0x1b   :  { %v137_v1 = vand.u32 2147483648, %v114_v27  ;;  %vm136_vm3 = vcmp.eq.f32.partialorder %v114_v27, 0.0  ;;  %v47_v16 = vadd.f32 138.35776, %v45_v63  ;;  %v44_v26 = vadd.f32 -275.9285, %v42_v14 }
  0x1c   :  { %v73_v40 = vadd.f32 -13.280682, %v71_v34  ;;  %v74_v54 = vadd.f32 -13.280682, %v72_v45 }
  0x1d   :  { %v49_v29 = vmul.f32 %v47_v16, %v340_v11 }
  0x1e   :  { %v75_v47 = vmul.f32 %v73_v40, %v340_v11  ;;  %v76_v0 = vmul.f32 %v74_v54, %v347_v13 }
  0x1f   :  { %v245_v30 = vpop.eup %244 }
  0x20   :  { %v116_v32 = vmul.f32 %v245_v30, %v113_v24  ;;  %v247_v35 = vpop.eup %246  ;;  %v363_v56 = vadd.f32 1.0, %v75_v47  ;;  %v375_v17 = vadd.f32 1.0, %v76_v0 }
  0x21   :  { %v128_v39 = vmul.f32 %v247_v35, %v114_v27 }
  0x22   :  { %v117_v36 = vmul.f32 %v245_v30, %v116_v32  ;;  %248 = vrcp.f32 %v363_v56  ;;  %vm84_vm4 = vweird.f32 %v363_v56  ;;  %vm99_vm11 = vweird.f32 %v375_v17 }
  0x23   :  { %v129_v42 = vmul.f32 %v247_v35, %v128_v39  ;;  %250 = vrcp.f32 %v375_v17  ;;  %v51_v39 = vadd.f32 -30.664799, %v49_v29  ;;  %v103_v29 = vand.u32 2147483647, %v375_v17 }
  0x24   :  { %v118_v41 = vmul.f32 0.5, %v117_v36  ;;  %v46_v36 = vmul.f32 %v44_v26, %v347_v13 }
  0x25   :  { %v130_v46 = vmul.f32 0.5, %v129_v42 }
  0x26   :  { %v119_v43 = vsub.f32 1.5, %v118_v41 }
  0x27   :  { %v131_v50 = vsub.f32 1.5, %v130_v46  ;;  %v48_v46 = vadd.f32 138.35776, %v46_v36 }
  0x28   :  { %v120_v48 = vmul.f32 %v245_v30, %v119_v43  ;;  %v381_v23 = vpop.eup %248 }
  0x29   :  { %v132_v55 = vmul.f32 %v247_v35, %v131_v50  ;;  %v80_v32 = vmul.f32 %v381_v23, %v363_v56  ;;  %v393_v41 = vpop.eup %250  ;;  %v50_v54 = vmul.f32 %v48_v46, %v347_v13  ;;  %vm85_vm5 = vweird.f32 %v381_v23 }
  0x2a   :  { %v121_v51 = vmul.f32 %v120_v48, %v113_v24  ;;  %v53_v48 = vmul.f32 %v51_v39, %v340_v11  ;;  %v88_v11 = vand.u32 2147483647, %v363_v56  ;;  %vm410_vm6 = vmor %vm84_vm4, %vm85_vm5  ;;  %vm100_vm12 = vweird.f32 %v393_v41 }
  0x2b   :  { %v133_v62 = vmul.f32 %v132_v55, %v114_v27  ;;  %v81_v42 = vsub.f32 1.0, %v80_v32  ;;  %vm432_vm14 = vmor %vm99_vm11, %vm100_vm12 }
  0x2c   :  { %v123_v57 = vsel %vm122_vm0, %v113_v24, %v121_v51  ;;  %vm89_vm9 = vcmp.eq.f32.partialorder %v88_v11, 8.507059e+37 }
  0x2d   :  { %v365_v58 = vsel %vm124_vm1, %v125_v49, %v123_v57  ;;  %v135_v15 = vsel %vm134_vm2, %v114_v27, %v133_v62  ;;  %v95_v49 = vmul.f32 %v393_v41, %v375_v17  ;;  %v82_v50 = vmul.f32 %v381_v23, %v81_v42 }
  0x2e   :  { %v139_v59 = vmul.f32 -0.007784894, %v365_v58  ;;  %v159_v60 = vmul.f32 0.007784696, %v365_v58  ;;  %v377_v18 = vsel %vm136_vm3, %v137_v1, %v135_v15  ;;  %vm205_vm1 = vcmp.lt.f32.partialorder %v323_v4, 0.5 }
  0x2f   :  { %v140_v21 = vmul.f32 -0.007784894, %v377_v18  ;;  %v160_v22 = vmul.f32 0.007784696, %v377_v18  ;;  %v96_v61 = vsub.f32 1.0, %v95_v49  ;;  %v83_v62 = vadd.f32 %v381_v23, %v82_v50 }
  0x30   :  { %v141_v2 = vadd.f32 -0.32239646, %v139_v59  ;;  %v161_v3 = vadd.f32 0.32246712, %v159_v60  ;;  %v55_v59 = vadd.f32 2.5066283, %v53_v48 }
  0x31   :  { %v142_v28 = vadd.f32 -0.32239646, %v140_v21  ;;  %v162_v27 = vadd.f32 0.32246712, %v160_v22  ;;  %v90_v60 = vand.u32 2147483648, %v363_v56  ;;  %v97_v16 = vmul.f32 %v393_v41, %v96_v61 }
  0x32   :  { %v143_v6 = vmul.f32 %v141_v2, %v365_v58  ;;  %v163_v8 = vmul.f32 %v161_v3, %v365_v58  ;;  %v57_v56 = vmul.f32 %v329_v7, %v55_v59  ;;  %vm211_vm2 = vcmp.lt.f32.partialorder %v336_v10, 0.02425 }
  0x33   :  { %v144_v31 = vmul.f32 %v142_v28, %v377_v18  ;;  %v164_v33 = vmul.f32 %v162_v27, %v377_v18  ;;  %v91_v15 = vor.u32 1.1754944e-38, %v90_v60  ;;  %v98_v27 = vadd.f32 %v393_v41, %v97_v16 }
  0x34   :  { %v145_v19 = vadd.f32 -2.4007583, %v143_v6  ;;  %v165_v20 = vadd.f32 2.4451342, %v163_v8  ;;  %v52_v6 = vadd.f32 -30.664799, %v50_v54 }
  0x35   :  { %v146_v37 = vadd.f32 -2.4007583, %v144_v31  ;;  %v166_v38 = vadd.f32 2.4451342, %v164_v33  ;;  %v102_v39 = vsel %vm432_vm14, %v393_v41, %v98_v27  ;;  %vm104_vm3 = vcmp.eq.f32.partialorder %v103_v29, 8.507059e+37 }
  0x36   :  { %v147_v24 = vmul.f32 %v145_v19, %v365_v58  ;;  %v167_v25 = vmul.f32 %v165_v20, %v365_v58  ;;  %v87_v19 = vsel %vm410_vm6, %v381_v23, %v83_v62  ;;  %v105_v23 = vand.u32 2147483648, %v375_v17 }
  0x37   :  { %v148_v43 = vmul.f32 %v146_v37, %v377_v18  ;;  %v168_v44 = vmul.f32 %v166_v38, %v377_v18  ;;  %v92_v28 = vsel %vm89_vm9, %v91_v15, %v87_v19  ;;  %vm206_vm6 = vcmp.lt.f32.partialorder %v325_v5, 0.5 }
  0x38   :  { %v169_v30 = vadd.f32 3.7544086, %v167_v25  ;;  %v149_v34 = vadd.f32 -2.5497324, %v147_v24  ;;  %v54_v24 = vmul.f32 %v52_v6, %v347_v13  ;;  %v93_v38 = vmul.f32 %v92_v28, %v57_v56 }
  0x39   :  { %v170_v47 = vadd.f32 3.7544086, %v168_v44  ;;  %v150_v51 = vadd.f32 -2.5497324, %v148_v43 }
  0x3a   :  { %v171_v35 = vmul.f32 %v169_v30, %v365_v58  ;;  %v151_v45 = vmul.f32 %v149_v34, %v365_v58  ;;  %v56_v17 = vadd.f32 2.5066283, %v54_v24 }
  0x3b   :  { %v172_v52 = vmul.f32 %v170_v47, %v377_v18  ;;  %v152_v0 = vmul.f32 %v150_v51, %v377_v18 }
  0x3c   :  { %v173_v40 = vadd.f32 1.0, %v171_v35  ;;  %v153_v53 = vadd.f32 4.3746643, %v151_v45  ;;  %v58_v4 = vmul.f32 %v333_v9, %v56_v17 }
  0x3d   :  { %v174_v55 = vadd.f32 1.0, %v172_v52  ;;  %v154_v21 = vadd.f32 4.3746643, %v152_v0 }
  0x3e   :  { %252 = vrcp.f32 %v173_v40  ;;  %v155_v2 = vmul.f32 %v153_v53, %v365_v58  ;;  %v186_v3 = vand.u32 2147483648, %v173_v40  ;;  %vm180_vm7 = vweird.f32 %v173_v40 }
  0x3f   :  { %254 = vrcp.f32 %v174_v55  ;;  %v184_v14 = vand.u32 2147483647, %v173_v40  ;;  %v156_v32 = vmul.f32 %v154_v21, %v377_v18  ;;  %vm195_vm15 = vweird.f32 %v174_v55 }
  0x40   :  { %v187_v22 = vor.u32 1.1754944e-38, %v186_v3  ;;  %v157_v25 = vadd.f32 2.938164, %v155_v2  ;;  %v201_v33 = vand.u32 2147483648, %v174_v55  ;;  %v199_v36 = vand.u32 2147483647, %v174_v55 }
  0x41   :  { %vm185_vm13 = vcmp.eq.f32.partialorder %v184_v14, 8.507059e+37  ;;  %v158_v44 = vadd.f32 2.938164, %v156_v32 }
  0x42   :  { %v202_v18 = vor.u32 1.1754944e-38, %v201_v33  ;;  %vm200_vm5 = vcmp.eq.f32.partialorder %v199_v36, 8.507059e+37 }
  0x44   :  { %v253_v57 = vpop.eup %252 }
  0x45   :  { %v176_v63 = vmul.f32 %v253_v57, %v173_v40  ;;  %vm181_vm8 = vweird.f32 %v253_v57  ;;  %v255_v7 = vpop.eup %254  ;;  %v106_v40 = vor.u32 1.1754944e-38, %v105_v23 }
  0x46   :  { %vm420_vm10 = vmor %vm180_vm7, %vm181_vm8  ;;  %v191_v30 = vmul.f32 %v255_v7, %v174_v55  ;;  %vm196_vm0 = vweird.f32 %v255_v7  ;;  %vm212_vm7 = vcmp.lt.f32.partialorder %v343_v12, 0.02425 }
  0x47   :  { %v177_v8 = vsub.f32 1.0, %v176_v63  ;;  %vm197_vm4 = vmor %vm195_vm15, %vm196_vm0  ;;  %v107_v48 = vsel %vm104_vm3, %v106_v40, %v102_v39 }
  0x48   :  { %v192_v35 = vsub.f32 1.0, %v191_v30  ;;  %v108_v51 = vmul.f32 %v107_v48, %v58_v4 }
  0x49   :  { %v178_v20 = vmul.f32 %v253_v57, %v177_v8 }
  0x4a   :  { %v193_v42 = vmul.f32 %v255_v7, %v192_v35 }
  0x4b   :  { %v179_v26 = vadd.f32 %v253_v57, %v178_v20 }
  0x4c   :  { %v194_v45 = vadd.f32 %v255_v7, %v193_v42 }
  0x4d   :  { %v183_v31 = vsel %vm420_vm10, %v253_v57, %v179_v26 }
  0x4e   :  { %v188_v34 = vsel %vm185_vm13, %v187_v22, %v183_v31  ;;  %v198_v49 = vsel %vm197_vm4, %v255_v7, %v194_v45 }
  0x4f   :  { %v189_v37 = vmul.f32 %v188_v34, %v157_v25  ;;  %v203_v41 = vsel %vm200_vm5, %v202_v18, %v198_v49 }
  0x50   :  { %v204_v50 = vmul.f32 %v203_v41, %v158_v44 }
  0x51   :  { %v207_v43 = vsub.f32 0.0, %v189_v37 }
  0x52   :  { %v208_v10 = vsub.f32 0.0, %v204_v50 }
  0x53   :  { %v209_v46 = vsel %vm205_vm1, %v189_v37, %v207_v43 }
  0x54   :  { %v213_v47 = vsel %vm211_vm2, %v209_v46, %v93_v38  ;;  %v210_v52 = vsel %vm206_vm6, %v204_v50, %v208_v10 }
  0x55   :  { %217 = vst [vmem:[#allocation5] sm:$0xff] %v213_v47  ;;  %v214_v9 = vsel %vm212_vm7, %v210_v52, %v108_v51 }
  0x56   :  { %218 = vst [vmem:[#allocation5 + $0x8] sm:$0xff] %v214_v9 }
  0x57   :  { %229 = dma.vmem_to_hbm [thread:$0]  %s225_s11, 256, %s227_s14, [#allocation4]  }
  0x58   :  { %306 = dma.done.wait [#allocation4], 256  }
  0x59   :  { %307 = vsyncadd [#allocation4], 4294967040 }
  0x5a   :  { %234 = vsyncpa [#allocation3], 1 }
  0x5b   :  { %235 = vsyncpa [#allocation4], 1 }

</bundles_post_ra>
